<compile_context>
chip_gen: v6e
topology: v6e:2x2x1
jax: 0.10.0
libtpu: 0.0.40
codegen_flags: <defaults>
</compile_context>

<pallas_src>
import jax
import jax.numpy as jnp
from jax import lax
from jax.experimental import pallas as pl
from jax.experimental.pallas import tpu as pltpu

IN_FEATURES = 32
OUT_FEATURES = 16
BATCH = 8


def linear_transpose_kernel(x_ref, wt_ref, b_ref, o_ref):
    # x_ref : (IN_FEATURES, BATCH)        raw (un-transposed) PyTorch input
    # wt_ref: (IN_FEATURES, OUT_FEATURES) weight pre-transposed once at init (= W.T)
    # b_ref : (1, OUT_FEATURES)           bias, reshaped once at init
    # o_ref : (BATCH, OUT_FEATURES)
    #
    # y[b, o] = sum_i x[i, b] * wt[i, o] == (x.T @ W.T)[b, o]
    # Both operands carry the contraction (IN) axis on dim 0, so a single
    # dot_general feeds the MXU directly -- no in-kernel transposes / padding.
    y = lax.dot_general(
        x_ref[...], wt_ref[...],
        dimension_numbers=(((0,), (0,)), ((), ())),
        preferred_element_type=jnp.float32,
    )  # (BATCH, OUT_FEATURES)
    # Bias add stays in f32 (VPU op, free filler; v5e has no bf16 VPU path).
    o_ref[...] = (y + b_ref[...]).astype(o_ref.dtype)


def prepare_params(w, b):
    """One-time, init-side parameter preprocessing (NOT on the per-call path).

    w: (OUT_FEATURES, IN_FEATURES) PyTorch Linear weight layout.
    b: (OUT_FEATURES,) bias.
    Returns (wt, b2) = (W.T with shape (IN, OUT), bias as (1, OUT)).
    """
    wt = jnp.asarray(w).T                       # (IN_FEATURES, OUT_FEATURES)
    b2 = jnp.asarray(b).reshape(1, OUT_FEATURES)  # (1, OUT_FEATURES)
    return wt, b2


@jax.jit
def my_model_forward(x, wt, b2):
    """x: (IN_FEATURES, BATCH) f32; wt: (IN, OUT) f32; b2: (1, OUT) f32."""
    return pl.pallas_call(
        linear_transpose_kernel,
        out_shape=jax.ShapeDtypeStruct((BATCH, OUT_FEATURES), jnp.float32),
        in_specs=[
            pl.BlockSpec(memory_space=pltpu.MemorySpace.VMEM),
            pl.BlockSpec(memory_space=pltpu.MemorySpace.VMEM),
            pl.BlockSpec(memory_space=pltpu.MemorySpace.VMEM),
        ],
        out_specs=pl.BlockSpec(memory_space=pltpu.MemorySpace.VMEM),
    )(x, wt, b2)


if __name__ == "__main__":
    key = jax.random.PRNGKey(0)
    kx, kw, kb = jax.random.split(key, 3)

    # Deterministic synthetic inputs / parameters (no checkpoint load).
    x = jax.random.normal(kx, (IN_FEATURES, BATCH), dtype=jnp.float32)
    w = jax.random.normal(kw, (OUT_FEATURES, IN_FEATURES), dtype=jnp.float32) * 0.1
    b = jax.random.normal(kb, (OUT_FEATURES,), dtype=jnp.float32) * 0.1

    # Init-time preprocessing -- happens once, outside the forward path.
    wt, b2 = prepare_params(w, b)
    wt, b2 = jax.block_until_ready((wt, b2))

    out = my_model_forward(x, wt, b2)
    out = jax.block_until_ready(out)

    # Reference check in plain JAX: base(x.T) = x.T @ W.T + b
    ref = x.T @ w.T + b
    assert out.shape == (BATCH, OUT_FEATURES)
    assert jnp.allclose(out, ref, atol=1e-4, rtol=1e-4)

    print("KERNEL_OK")
</pallas_src>

<mosaic_0001>
module attributes {stable_mosaic.version = 11 : i64} {
  func.func @linear_transpose_kernel(%arg0: memref<32x8xf32, #tpu.memory_space<vmem>>, %arg1: memref<32x16xf32, #tpu.memory_space<vmem>>, %arg2: memref<1x16xf32, #tpu.memory_space<vmem>>, %arg3: memref<8x16xf32, #tpu.memory_space<vmem>>) attributes {dimension_semantics = [], scalar_prefetch = 0 : i64, scratch_operands = 0 : i64, tpu.core_type = #tpu.core_type<tc>} {
    %c0 = arith.constant 0 : index
    %c0_0 = arith.constant 0 : index
    %0 = vector.load %arg0[%c0, %c0_0] : memref<32x8xf32, #tpu.memory_space<vmem>>, vector<32x8xf32>
    %c0_1 = arith.constant 0 : index
    %c0_2 = arith.constant 0 : index
    %1 = vector.load %arg1[%c0_1, %c0_2] : memref<32x16xf32, #tpu.memory_space<vmem>>, vector<32x16xf32>
    %cst = arith.constant dense<0.000000e+00> : vector<8x16xf32>
    %2 = tpu.matmul %0, %1, %cst {dimension_numbers = #tpu.dot_dimension_numbers<[0], [0], [1], [1], [0, 1, 1, 1], [], []>} : vector<32x8xf32>, vector<32x16xf32>, vector<8x16xf32> -> vector<8x16xf32>
    %c0_3 = arith.constant 0 : index
    %c0_4 = arith.constant 0 : index
    %3 = vector.load %arg2[%c0_3, %c0_4] : memref<1x16xf32, #tpu.memory_space<vmem>>, vector<1x16xf32>
    %4 = vector.broadcast %3 : vector<1x16xf32> to vector<8x16xf32>
    %5 = arith.addf %2, %4 : vector<8x16xf32>
    %c0_5 = arith.constant 0 : index
    %c0_6 = arith.constant 0 : index
    %6 = vector.load %arg3[%c0_5, %c0_6] : memref<8x16xf32, #tpu.memory_space<vmem>>, vector<8x16xf32>
    tpu.vector_store %arg3[%c0_5, %c0_6], %5 {strides = array<i32>} : memref<8x16xf32, #tpu.memory_space<vmem>>, vector<8x16xf32>,
    return
  }
}

</mosaic_0001>

<bundles_post_ra>
// kernel: my_model_forward.1
= control target key start
LH: loop header
LB: loop body
LE: loop exit
PB: predicated region body
PF: predicated region fallthrough
CT: control target
= control target key end

     0   :  { %v195_v1 = vmov 0.0   ;;  %vm196_vm0 = vmmov 0   ;;  %s248_s0 = inlined_call_operand.vmem [shape: f32[32,8], index: 0, kind: input, shape index: {}]   ;;  %s249_s1 = inlined_call_operand.vmem [shape: f32[32,16], index: 1, kind: input, shape index: {}]   ;;  %s250_s2 = inlined_call_operand.vmem [shape: f32[1,16], index: 2, kind: input, shape index: {}]   ;;  %s251_s3 = inlined_call_operand.hbm [shape: f32[8,16], index: 3, kind: output, shape index: {}]  }
   0x1   :  { %v15_v0 = vld [vmem:[%s248_s0] sm:$0xff]  ;;  %159 = vmatprep.subr.mxu0 %v195_v1  ;;  %v22_v2 = vld [vmem:[%s249_s1 + $0x18] sm:$0xff]  ;;  %v21_v3 = vld [vmem:[%s249_s1 + $0x10] sm:$0xff]  ;;  %167 = vmatprep.mubr.msk.f32.mxu0 %vm196_vm0, %v195_v1 }
   0x2   :  { %30 = vxpose.xlu0.b32.start [1/4] (short) (narrow) %v15_v0, 8  ;;  %v16_v4 = vld [vmem:[%s248_s0 + $0x8] sm:$0xff]  ;;  %160 = vmatpush3.msra.mxu0 %v22_v2 }
   0x3   :  { %161 = vmatprep.subr.mxu0 %v195_v1  ;;  %v20_v5 = vld [vmem:[%s249_s1 + $0x8] sm:$0xff] }
   0x4   :  { %8 = vsyncpa [#allocation3], 0  ;;  %162 = vmatpush3.msra.mxu0 %v21_v3  ;;  %v19_v6 = vld [vmem:[%s249_s1] sm:$0xff]  ;;  %v17_v7 = vld [vmem:[%s248_s0 + $0x10] sm:$0xff]  ;;  %vm62_vm1 = vcmask 261120   ;;  %s197_s1 = smov [#allocation2]  }
   0x5   :  { %163 = vmatprep.subr.mxu0 %v195_v1  ;;  %v18_v8 = vld [vmem:[%s248_s0 + $0x18] sm:$0xff]  ;;  %v152_v10 = vld [vmem:[%s250_s2] ss:$0 sm:$0xff]  ;;  %s144_s30 = sshll.u32 %s197_s1, 4  ;;  %vm136_vm2 = vcmask 130048   ;;  %s145_s30 = int_to_ptr.vmem [resolvable:$true] %s144_s30 }
   0x6   :  { %31 = vxpose.xlu0.b32.cont [2/4] (short) (narrow) %v16_v4, 8  ;;  %164 = vmatpush3.msra.mxu0 %v20_v5  ;;  %s173_s4 = scalar_lea.vmem %s145_s30, 128  ;;  %p178_p1 = scmp.lt.s32.totalorder %s145_s30, %s145_s30 }
   0x7   :  { %165 = vmatprep.subr.mxu0 %v195_v1  ;;  %p174_p0 = scmp.ne.s32.totalorder %s145_s30, %s173_s4  ;;  %p179_p2 = scmp.lt.s32.totalorder %s173_s4, %s173_s4 }
   0x8   :  { %166 = vmatpush3.msra.mxu0 %v19_v6 }
   0x9   :  { %p180_p3 = por %p179_p2, %p178_p1 }
   0xa   :  { %32 = vxpose.xlu0.b32.cont [3/4] (short) (narrow) %v17_v7, 8 }
   0xb   :  { %p181_p4 = pnand %p180_p3, %p174_p0 }
   0xe   :  { %33 = vxpose.xlu0.b32.end [4/4] (short) (narrow) %v18_v8, 8 }
  0x7e   :  { %v46_v9 = vpop.trf.xlu0 }
  0x7f   :  { %168 = vmatmul.mubr.msk.f32.vlgmr.msra.gmra.mxu0 %vm62_vm1, %v46_v9 }
 0x13f   :  { %v132_v11 = vpop.f32.mrf.mxu0 }
 0x140   :  { %v133_v12 = vadd.f32 %v152_v10, %v132_v11 }
 0x141   :  { %v169_v13 = vpop.f32.mrf.mxu0 }
 0x142   :  { %137 = vst.msk [vmem:[#allocation2] sm:$0xff] %vm136_vm2, %v133_v12 }
 0x143   :  { %184 = shalt.err (!%p181_p4)
}
 0x144   :  { %147 = dma.vmem_to_hbm [thread:$0]  %s145_s30, 128, %s251_s3, [#allocation3]  }
 0x145   :  { %193 = dma.done.wait [#allocation3], 128  }
 0x146   :  { %194 = vsyncadd [#allocation3], 4294967168 }
 0x147   :  { %151 = vsyncpa [#allocation3], 1 }

</bundles_post_ra>
